<compile_context>
chip_gen: v7x
topology: tpu7x:2x2x1
jax: 0.10.0
libtpu: 0.0.40
codegen_flags: <defaults>
</compile_context>

<pallas_src>
import functools

import jax
import jax.numpy as jnp
from jax.experimental import pallas as pl
from jax.experimental.pallas import tpu as pltpu

F32 = jnp.float32
MXU_DTYPE = jnp.bfloat16        # matmul operand dtype; accumulation is always f32
_NEG_INF = -1e30                # finite "minus infinity" for the causal mask


# --------------------------------------------------------------------------
# Small helpers
# --------------------------------------------------------------------------
def _pick_tile(dim, target, align):
    """Largest tile <= target that divides dim (multiple of align), else whole dim."""
    if dim <= target:
        return dim
    for t in range(target, align - 1, -align):
        if dim % t == 0:
            return t
    return dim


def _pick_batch_tile(n, cap=8):
    """Largest divisor of n <= cap, preferring >= 2 grid steps (v7x megacore)."""
    divisors = [d for d in range(1, min(cap, n) + 1) if n % d == 0]
    for d in reversed(divisors):
        if n // d >= 2:
            return d
    return divisors[-1]


_BUFFERED1_OK = None


def _buffered1_supported():
    """Probe once whether BlockSpec(pipeline_mode=pl.Buffered(1)) lowers+runs."""
    global _BUFFERED1_OK
    if _BUFFERED1_OK is None:
        try:
            def _probe(x_ref, o_ref):
                o_ref[...] = x_ref[...] * 2.0

            r = pl.pallas_call(
                _probe,
                out_shape=jax.ShapeDtypeStruct((16, 128), jnp.float32),
                grid=(2,),
                in_specs=[pl.BlockSpec((8, 128), lambda i: (0, 0),
                                       pipeline_mode=pl.Buffered(1))],
                out_specs=pl.BlockSpec((8, 128), lambda i: (i, 0)),
            )(jnp.ones((8, 128), jnp.float32))
            jax.block_until_ready(r)
            _BUFFERED1_OK = True
        except Exception:
            _BUFFERED1_OK = False
    return _BUFFERED1_OK


def _const_block_spec(shape):
    """BlockSpec for a grid-constant operand (weights/biases): single-buffered
    when supported so v7x VMEM is not wasted on a second copy."""
    idx = lambda *_: (0,) * len(shape)
    if _buffered1_supported():
        return pl.BlockSpec(shape, idx, pipeline_mode=pl.Buffered(1))
    return pl.BlockSpec(shape, idx)


def _block_vmem_limit(m, d):
    """Scoped-VMEM budget for one fused block: bf16 weights (worst-case x2
    buffers), bf16 activation I/O (double buffered), bf16 scratch, f32 live
    values; clamped to [32 MiB, 64 MiB] (safe on v5e/v6e/v7x)."""
    weights = 2 * (d * 3 * d + d * d + d * 4 * d + 4 * d * d)   # bf16 bytes
    scratch = 2 * (m * 3 * d + m * d)                           # bf16 bytes
    act_io = 2 * 2 * (2 * m * d)                                # bf16 in+out, 2 buffers
    live = 4 * m * (4 * d + 3 * d + 4 * d)                      # f32 working values
    est = 2 * weights + scratch + act_io + live
    return int(min(max(2 * est, 32 << 20), 64 << 20))


# --------------------------------------------------------------------------
# Tiled matmul / linear (accumulator scratch, pl.when init/finalize)
# --------------------------------------------------------------------------
def _matmul_kernel(x_ref, w_ref, o_ref, acc_ref):
    @pl.when(pl.program_id(2) == 0)
    def _():
        acc_ref[...] = jnp.zeros_like(acc_ref)

    acc_ref[...] += jnp.dot(x_ref[...], w_ref[...],
                            preferred_element_type=jnp.float32)

    @pl.when(pl.program_id(2) == pl.num_programs(2) - 1)
    def _():
        o_ref[...] = acc_ref[...].astype(o_ref.dtype)


def _linear_kernel(x_ref, w_ref, b_ref, o_ref, acc_ref):
    @pl.when(pl.program_id(2) == 0)
    def _():
        acc_ref[...] = jnp.zeros_like(acc_ref)

    acc_ref[...] += jnp.dot(x_ref[...], w_ref[...],
                            preferred_element_type=jnp.float32)

    @pl.when(pl.program_id(2) == pl.num_programs(2) - 1)
    def _():
        o_ref[...] = (acc_ref[...] + b_ref[...]).astype(o_ref.dtype)


def pallas_matmul(x, w, b=None, *, tm=512, tn=256, tk=512, out_dtype=F32):
    M, K = x.shape
    K2, N = w.shape
    assert K == K2
    tm = _pick_tile(M, tm, 8)
    tn = _pick_tile(N, tn, 128)
    tk = _pick_tile(K, tk, 128)
    grid = (M // tm, N // tn, K // tk)
    if x.dtype != MXU_DTYPE:
        x = x.astype(MXU_DTYPE)
    if w.dtype != MXU_DTYPE:
        w = w.astype(MXU_DTYPE)
    x_spec = pl.BlockSpec((tm, tk), lambda i, j, k: (i, k))
    w_spec = pl.BlockSpec((tk, tn), lambda i, j, k: (k, j))
    common = dict(
        out_shape=jax.ShapeDtypeStruct((M, N), out_dtype),
        grid=grid,
        out_specs=pl.BlockSpec((tm, tn), lambda i, j, k: (i, j)),
        scratch_shapes=[pltpu.VMEM((tm, tn), jnp.float32)],
        compiler_params=pltpu.CompilerParams(
            dimension_semantics=("parallel", "parallel", "arbitrary")),
    )
    if b is None:
        return pl.pallas_call(_matmul_kernel,
                              in_specs=[x_spec, w_spec], **common)(x, w)
    b = b.reshape(1, N).astype(F32)
    b_spec = pl.BlockSpec((1, tn), lambda i, j, k: (0, j))
    return pl.pallas_call(_linear_kernel,
                          in_specs=[x_spec, w_spec, b_spec], **common)(x, w, b)


# --------------------------------------------------------------------------
# Fused CLIP ResidualAttentionBlock (one pallas_call per block)
# --------------------------------------------------------------------------
def _ln_inline(x, g, b, eps=1e-5):
    mu = jnp.mean(x, axis=-1, keepdims=True)
    var = jnp.mean(jnp.square(x - mu), axis=-1, keepdims=True)
    return (x - mu) * jax.lax.rsqrt(var + eps) * g + b


def _block_kernel(*refs, n_heads, causal, apply_pre_ln, cls_only, bt, seq_len):
    if apply_pre_ln:
        (x_ref, ln1_g, ln1_b, w_qkv, b_qkv, w_o, b_o,
         ln2_g, ln2_b, w_fc, b_fc, w_proj, b_proj,
         pre_g, pre_b, o_ref, qkv_sc, attn_sc) = refs
    else:
        (x_ref, ln1_g, ln1_b, w_qkv, b_qkv, w_o, b_o,
         ln2_g, ln2_b, w_fc, b_fc, w_proj, b_proj,
         o_ref, qkv_sc, attn_sc) = refs
        pre_g = pre_b = None

    T = seq_len
    D = x_ref.shape[-1]
    Dh = D // n_heads
    M = bt * T
    scale = 1.0 / float(Dh) ** 0.5

    x = x_ref[...].astype(jnp.float32).reshape(M, D)
    if apply_pre_ln:                                   # fused ln_pre (first vision block)
        x = _ln_inline(x, pre_g[...], pre_b[...])

    # ---- attention branch: x = x + (MHA(ln1(x)) @ W_o + b_o) ----
    h = _ln_inline(x, ln1_g[...], ln1_b[...])
    qkv_sc[...] = (jnp.dot(h.astype(MXU_DTYPE), w_qkv[...],
                           preferred_element_type=jnp.float32)
                   + b_qkv[...]).astype(qkv_sc.dtype)   # (M, 3D) bf16 in VMEM

    if causal:
        row = jax.lax.broadcasted_iota(jnp.int32, (T, T), 0)
        col = jax.lax.broadcasted_iota(jnp.int32, (T, T), 1)
        mask = jnp.where(col <= row, 0.0, _NEG_INF)     # (T, T) additive
    else:
        mask = None

    # Per-(sequence, head) attention.  Offsets are static (lane-dim dynamic
    # slicing is not portable on Mosaic); per-head results are spilled to the
    # attn scratch so no large values stay live across iterations.
    for b in range(bt):
        r0 = b * T
        for hh in range(n_heads):
            c0 = hh * Dh
            q = qkv_sc[r0:r0 + T, c0:c0 + Dh]
            k = qkv_sc[r0:r0 + T, D + c0:D + c0 + Dh]
            v = qkv_sc[r0:r0 + T, 2 * D + c0:2 * D + c0 + Dh]
            s = jax.lax.dot_general(q, k, (((1,), (1,)), ((), ())),
                                    preferred_element_type=jnp.float32) * scale
            if mask is not None:
                s = s + mask
            s = s - jnp.max(s, axis=-1, keepdims=True)
            p = jnp.exp(s)
            p = p * pl.reciprocal(jnp.sum(p, axis=-1, keepdims=True), approx=True)
            oh = jnp.dot(p.astype(MXU_DTYPE), v,
                         preferred_element_type=jnp.float32)      # (T, Dh)
            attn_sc[r0:r0 + T, c0:c0 + Dh] = oh.astype(attn_sc.dtype)

    # ONE full-K out-projection over all heads / sequences.
    attn = jnp.dot(attn_sc[...], w_o[...], preferred_element_type=jnp.float32)
    x = x + attn + b_o[...]

    # ---- MLP branch: x = x + (QuickGELU(ln2(x) @ W_fc + b_fc) @ W_proj + b_proj) ----
    # TODO(synk): for D >= 768 on v5e, chunk the 4D hidden dim so the (M, 4D)
    # f32 intermediate stays under the 16 MiB default scoped VMEM.
    h = _ln_inline(x, ln2_g[...], ln2_b[...])
    h = jnp.dot(h.astype(MXU_DTYPE), w_fc[...],
                preferred_element_type=jnp.float32) + b_fc[...]
    h = h * jax.nn.sigmoid(1.702 * h)                   # QuickGELU, f32
    h = jnp.dot(h.astype(MXU_DTYPE), w_proj[...],
                preferred_element_type=jnp.float32) + b_proj[...]
    x = x + h

    y = x.reshape(bt, T, D)
    if cls_only:                                        # last vision block: CLS row only
        y = y[:, :1, :]
    o_ref[...] = y.astype(o_ref.dtype)


def transformer_block(x, p, n_heads, *, causal, bt=1, pre_ln=None,
                      cls_only=False, out_dtype=None):
    N, T, D = x.shape
    assert N % bt == 0
    out_dtype = out_dtype or x.dtype
    apply_pre_ln = pre_ln is not None
    out_T = 1 if cls_only else T

    x_spec = pl.BlockSpec((bt, T, D), lambda i: (i, 0, 0))
    out_spec = pl.BlockSpec((bt, out_T, D), lambda i: (i, 0, 0))

    def cvec(n):
        return _const_block_spec((1, n))

    def cmat(r, c):
        return _const_block_spec((r, c))

    in_specs = [x_spec,
                cvec(D), cvec(D),                      # ln1
                cmat(D, 3 * D), cvec(3 * D),           # qkv proj
                cmat(D, D), cvec(D),                   # out proj
                cvec(D), cvec(D),                      # ln2
                cmat(D, 4 * D), cvec(4 * D),           # mlp fc
                cmat(4 * D, D), cvec(D)]               # mlp proj
    args = [x,
            p["ln1_g"], p["ln1_b"],
            p["w_qkv"], p["b_qkv"],
            p["w_o"], p["b_o"],
            p["ln2_g"], p["ln2_b"],
            p["w_fc"], p["b_fc"],
            p["w_proj"], p["b_proj"]]
    if apply_pre_ln:
        in_specs += [cvec(D), cvec(D)]
        args += [pre_ln[0], pre_ln[1]]

    kern = functools.partial(_block_kernel, n_heads=n_heads, causal=causal,
                             apply_pre_ln=apply_pre_ln, cls_only=cls_only,
                             bt=bt, seq_len=T)
    M = bt * T
    return pl.pallas_call(
        kern,
        out_shape=jax.ShapeDtypeStruct((N, out_T, D), out_dtype),
        grid=(N // bt,),
        in_specs=in_specs,
        out_specs=out_spec,
        scratch_shapes=[pltpu.VMEM((M, 3 * D), MXU_DTYPE),   # qkv scratch
                        pltpu.VMEM((M, D), MXU_DTYPE)],       # per-head attn out
        compiler_params=pltpu.CompilerParams(
            dimension_semantics=("parallel",),
            vmem_limit_bytes=_block_vmem_limit(M, D)),
    )(*args)


# --------------------------------------------------------------------------
# Fused head: LayerNorm -> projection -> L2 normalize (one narrow HBM store)
# --------------------------------------------------------------------------
def _head_kernel(x_ref, g_ref, b_ref, w_ref, o_ref):
    x = x_ref[...].astype(jnp.float32)                  # (tm, D)
    h = _ln_inline(x, g_ref[...], b_ref[...])
    y = jnp.dot(h.astype(MXU_DTYPE), w_ref[...],
                preferred_element_type=jnp.float32)     # (tm, F)
    inv = jax.lax.rsqrt(jnp.sum(y * y, axis=-1, keepdims=True) + 1e-12)
    o_ref[...] = (y * inv).astype(o_ref.dtype)


def pallas_ln_proj_l2(x, g, b, w, *, tm=256):
    M, D = x.shape
    _, Fd = w.shape
    tm = _pick_tile(M, tm, 8)
    return pl.pallas_call(
        _head_kernel,
        out_shape=jax.ShapeDtypeStruct((M, Fd), F32),
        grid=(M // tm,),
        in_specs=[pl.BlockSpec((tm, D), lambda i: (i, 0)),
                  _const_block_spec((1, D)),
                  _const_block_spec((1, D)),
                  _const_block_spec((D, Fd))],
        out_specs=pl.BlockSpec((tm, Fd), lambda i: (i, 0)),
        compiler_params=pltpu.CompilerParams(dimension_semantics=("parallel",)),
    )(x, g.reshape(1, D).astype(F32), b.reshape(1, D).astype(F32),
      w.astype(MXU_DTYPE))


# --------------------------------------------------------------------------
# CLIP logits: one grid step, lane-dense (B, C) store
# --------------------------------------------------------------------------
def _logits_kernel(img_ref, txt_ref, s_ref, o_ref):
    img = img_ref[...][:, None, :]                      # (B, 1, F) f32
    txt = txt_ref[...]                                  # (B, C, F) f32
    sim = jnp.einsum('bqf,bcf->bqc', img, txt,
                     preferred_element_type=jnp.float32)[:, 0, :]   # (B, C)
    o_ref[...] = (s_ref[...] * sim).astype(o_ref.dtype)


def pallas_clip_logits(img, txt, scale):
    B, Fd = img.shape
    _, C, _ = txt.shape
    return pl.pallas_call(
        _logits_kernel,
        out_shape=jax.ShapeDtypeStruct((B, C), F32),
        grid=(1,),
        in_specs=[pl.BlockSpec((B, Fd), lambda i: (0, 0)),
                  pl.BlockSpec((B, C, Fd), lambda i: (0, 0, 0)),
                  pl.BlockSpec((1, 1), lambda i: (0, 0))],
        out_specs=pl.BlockSpec((B, C), lambda i: (0, 0)),
    )(img.astype(F32), txt.astype(F32), scale.reshape(1, 1).astype(F32))


# --------------------------------------------------------------------------
# Model glue (reshapes / residual routing in JAX; hot compute in Pallas)
# --------------------------------------------------------------------------
def encode_image(image, vp, n_heads, patch):
    # image: (B, 3, H, W) NCHW
    B, C, H, W = image.shape
    gh, gw = H // patch, W // patch
    patches = image.reshape(B, C, gh, patch, gw, patch)
    patches = patches.transpose(0, 2, 4, 1, 3, 5).reshape(B * gh * gw,
                                                          C * patch * patch)
    # conv-as-matmul; bf16 store since LN (inside the first block) follows.
    x = pallas_matmul(patches.astype(MXU_DTYPE), vp["w_patch"],
                      out_dtype=MXU_DTYPE)
    width = x.shape[-1]
    x = x.reshape(B, gh * gw, width)
    cls = jnp.broadcast_to(vp["class_embedding"], (B, 1, width))
    x = jnp.concatenate([cls, x], axis=1)                # (B, N+1, width) bf16
    x = (x + vp["pos"]).astype(MXU_DTYPE)
    n_blocks = len(vp["blocks"])
    for li, blk in enumerate(vp["blocks"]):
        x = transformer_block(
            x, blk, n_heads, causal=False, bt=1,
            pre_ln=(vp["ln_pre_g"], vp["ln_pre_b"]) if li == 0 else None,
            cls_only=(li == n_blocks - 1),               # last block: CLS row only
            out_dtype=MXU_DTYPE)
    x_cls = x.reshape(B, width)                          # (B, width) bf16
    # fused ln_post + proj + L2-normalize -> (B, feat_dim) f32
    return pallas_ln_proj_l2(x_cls, vp["ln_post_g"], vp["ln_post_b"], vp["proj"])


def text_prompt_learner(q, embeded_text, pp):
    # TODO(synk): the real text_prompt_learner is an external injected module
    # (set_text_prompt_module); deterministic stand-in: learned context tokens
    # shifted by a linear function of the image query q.
    B = q.shape[0]
    Ccls, L, D = embeded_text.shape
    p_len = pp["ctx"].shape[0]
    shift = pallas_matmul(q, pp["meta_w"], pp["meta_b"])          # (B, D) f32
    ctx = pp["ctx"][None, None] + shift[:, None, None, :]         # (B, 1, p_len, D)
    x = jnp.broadcast_to(embeded_text[None], (B, Ccls, L, D))
    x = x.at[:, :, 1:1 + p_len, :].set(jnp.broadcast_to(ctx, (B, Ccls, p_len, D)))
    prompt_loss = jnp.float32(0.0)
    return prompt_loss, x.reshape(B * Ccls, L, D)


def encode_text(q, params, n_heads):
    tp = params["text"]
    embeded_text = params["embeded_text"]          # (Ccls, L, D) f32
    tokenized_text = params["tokenized_text"]      # (Ccls, L) int32
    B = q.shape[0]
    Ccls, L, D = embeded_text.shape
    N = B * Ccls

    prompt_loss, x = text_prompt_learner(q, embeded_text, params["prompt"])
    x = (x + tp["pos"]).astype(MXU_DTYPE)          # bf16 activations between blocks
    bt = _pick_batch_tile(N, 8)                    # several sequences per grid step
    for blk in tp["blocks"]:
        x = transformer_block(x, blk, n_heads, causal=True, bt=bt,
                              out_dtype=MXU_DTYPE)
    # EOT pooling: gather the EOT token, then fused ln_final + text_projection
    # + L2-normalize.
    tok_rep = jnp.broadcast_to(tokenized_text[None], (B, Ccls, L)).reshape(N, L)
    eot = jnp.argmax(tok_rep, axis=-1)
    x_eot = jnp.take_along_axis(x, eot[:, None, None], axis=1)[:, 0, :]   # (N, D)
    feats = pallas_ln_proj_l2(x_eot, tp["ln_final_g"], tp["ln_final_b"],
                              tp["text_projection"])              # (N, feat_dim)
    return feats, prompt_loss


def clip_s_zoo_forward(image, params, *, n_heads=2, patch=16, train=False):
    image_features = encode_image(image, params["vision"], n_heads, patch)  # L2-normed
    text_features, text_prompt_loss = encode_text(image_features, params, n_heads)
    B, Dfeat = image_features.shape
    text_features = text_features.reshape(B, -1, Dfeat)           # already L2-normed
    output_features = {
        "img_features": image_features,
        "text_features": text_features,
        "features": image_features,
    }
    logit_scale = jnp.exp(params["logit_scale"]).astype(F32)
    logits = pallas_clip_logits(image_features, text_features, logit_scale)
    if train:
        return logits, output_features, text_prompt_loss
    return logits, output_features


# --------------------------------------------------------------------------
# Deterministic parameter construction (synthetic — no checkpoint loading)
# --------------------------------------------------------------------------
def _norm(key, shape, std=0.02):
    return (std * jax.random.normal(key, shape)).astype(F32)


def _init_block(key, D):
    ks = jax.random.split(key, 4)
    return dict(
        ln1_g=jnp.ones((D,), F32), ln1_b=jnp.zeros((D,), F32),
        w_qkv=_norm(ks[0], (D, 3 * D)), b_qkv=jnp.zeros((3 * D,), F32),
        w_o=_norm(ks[1], (D, D)), b_o=jnp.zeros((D,), F32),
        ln2_g=jnp.ones((D,), F32), ln2_b=jnp.zeros((D,), F32),
        w_fc=_norm(ks[2], (D, 4 * D)), b_fc=jnp.zeros((4 * D,), F32),
        w_proj=_norm(ks[3], (4 * D, D)), b_proj=jnp.zeros((D,), F32),
    )


def build_params(key, *, img_channels=3, patch=16, n_patches=4, vision_width=32,
                 vision_layers=2, text_width=32, text_layers=2, ctx_len=8,
                 vocab=64, feat_dim=16, n_classes=2, p_length=2):
    keys = jax.random.split(key, 16)
    vision = dict(
        w_patch=_norm(keys[0], (img_channels * patch * patch, vision_width)),
        class_embedding=_norm(keys[1], (vision_width,)),
        pos=_norm(keys[2], (n_patches + 1, vision_width)),
        ln_pre_g=jnp.ones((vision_width,), F32), ln_pre_b=jnp.zeros((vision_width,), F32),
        blocks=[_init_block(k, vision_width) for k in jax.random.split(keys[3], vision_layers)],
        ln_post_g=jnp.ones((vision_width,), F32), ln_post_b=jnp.zeros((vision_width,), F32),
        proj=_norm(keys[4], (vision_width, feat_dim)),
    )
    text = dict(
        pos=_norm(keys[5], (ctx_len, text_width)),
        blocks=[_init_block(k, text_width) for k in jax.random.split(keys[6], text_layers)],
        ln_final_g=jnp.ones((text_width,), F32), ln_final_b=jnp.zeros((text_width,), F32),
        text_projection=_norm(keys[7], (text_width, feat_dim)),
    )
    prompt = dict(
        ctx=_norm(keys[8], (p_length, text_width)),
        meta_w=_norm(keys[9], (feat_dim, text_width)),
        meta_b=jnp.zeros((text_width,), F32),
    )
    token_embedding = _norm(keys[10], (vocab, text_width))

    # TODO(synk): the real module tokenizes class-name strings with the CLIP BPE
    # tokenizer; tokenized_text is built so argmax(-1) lands on the EOT token.
    sot, eot = vocab - 2, vocab - 1
    rows = []
    for c in range(n_classes):
        row = [sot, 10, 10, 5 + c, 7, eot, 0, 0][:ctx_len]
        rows.append(row)
    tokenized_text = jnp.asarray(rows, dtype=jnp.int32)            # (n_classes, ctx_len)
    embeded_text = token_embedding[tokenized_text]                 # (n_classes, ctx_len, D)

    return dict(
        vision=vision,
        text=text,
        prompt=prompt,
        token_embedding=token_embedding,
        tokenized_text=tokenized_text,
        embeded_text=embeded_text,
        logit_scale=jnp.asarray(jnp.log(1.0 / 0.07), F32),
    )


def prepare_params(params):
    """One-time prep: MXU weights -> bf16, LN params / biases -> (1, N) f32.
    Avoids re-casting weights on every forward / every block call."""
    def vec(v):
        return v.reshape(1, -1).astype(F32)

    def blk(p):
        return dict(
            ln1_g=vec(p["ln1_g"]), ln1_b=vec(p["ln1_b"]),
            w_qkv=p["w_qkv"].astype(MXU_DTYPE), b_qkv=vec(p["b_qkv"]),
            w_o=p["w_o"].astype(MXU_DTYPE), b_o=vec(p["b_o"]),
            ln2_g=vec(p["ln2_g"]), ln2_b=vec(p["ln2_b"]),
            w_fc=p["w_fc"].astype(MXU_DTYPE), b_fc=vec(p["b_fc"]),
            w_proj=p["w_proj"].astype(MXU_DTYPE), b_proj=vec(p["b_proj"]),
        )

    v = params["vision"]
    vision = dict(
        w_patch=v["w_patch"].astype(MXU_DTYPE),
        class_embedding=v["class_embedding"].reshape(1, 1, -1).astype(MXU_DTYPE),
        pos=v["pos"][None].astype(MXU_DTYPE),
        ln_pre_g=vec(v["ln_pre_g"]), ln_pre_b=vec(v["ln_pre_b"]),
        blocks=[blk(b) for b in v["blocks"]],
        ln_post_g=vec(v["ln_post_g"]), ln_post_b=vec(v["ln_post_b"]),
        proj=v["proj"].astype(MXU_DTYPE),
    )
    t = params["text"]
    text = dict(
        pos=t["pos"][None].astype(MXU_DTYPE),
        blocks=[blk(b) for b in t["blocks"]],
        ln_final_g=vec(t["ln_final_g"]), ln_final_b=vec(t["ln_final_b"]),
        text_projection=t["text_projection"].astype(MXU_DTYPE),
    )
    p = params["prompt"]
    prompt = dict(
        ctx=p["ctx"].astype(F32),
        meta_w=p["meta_w"].astype(MXU_DTYPE),
        meta_b=p["meta_b"].astype(F32),
    )
    return dict(
        vision=vision,
        text=text,
        prompt=prompt,
        tokenized_text=params["tokenized_text"],
        embeded_text=params["embeded_text"].astype(F32),
        logit_scale=params["logit_scale"].astype(F32),
    )


if __name__ == "__main__":
    key = jax.random.PRNGKey(0)
    k_img, k_params = jax.random.split(key)

    B, C, H, W = 2, 3, 32, 32          # patch=16 -> 2x2=4 patches (+1 cls token)
    image = jax.random.normal(k_img, (B, C, H, W), dtype=F32)

    # NOTE: toy dims (D=32, feat=16, C=2) are for correctness only; benchmark
    # with production D/T/feat dims (128-lane multiples) per the perf review.
    params = prepare_params(build_params(k_params))

    logits, output_features = clip_s_zoo_forward(image, params, n_heads=2,
                                                 patch=16, train=False)
    jax.block_until_ready(logits)
    jax.block_until_ready(output_features["text_features"])

    assert logits.shape == (2, 2)
    assert output_features["img_features"].shape == (2, 16)
    assert output_features["text_features"].shape == (2, 2, 16)
    assert bool(jnp.all(jnp.isfinite(logits)))
    print("KERNEL_OK")
</pallas_src>

<mosaic_0001>
module attributes {stable_mosaic.version = 11 : i64} {
  func.func @_matmul_kernel(%arg0: i32, %arg1: i32, %arg2: i32, %arg3: memref<8x384xbf16, #tpu.memory_space<vmem>>, %arg4: memref<384x32xbf16, #tpu.memory_space<vmem>>, %arg5: memref<8x32xbf16, #tpu.memory_space<vmem>>, %arg6: memref<8x32xf32, #tpu.memory_space<vmem>>) attributes {dimension_semantics = [#tpu.dimension_semantics<parallel>, #tpu.dimension_semantics<parallel>, #tpu.dimension_semantics<arbitrary>], iteration_bounds = array<i64: 1, 1, 2>, scalar_prefetch = 0 : i64, scratch_operands = 1 : i64, tpu.core_type = #tpu.core_type<tc>, window_params = [{transform_indices = @transform_0, window_bounds = array<i64: 8, 384>}, {transform_indices = @transform_1, window_bounds = array<i64: 384, 32>}, {transform_indices = @transform_2, window_bounds = array<i64: 8, 32>}]} {
    %c0_i32 = arith.constant 0 : i32
    %0 = arith.cmpi eq, %arg2, %c0_i32 : i32
    %1 = arith.extui %0 : i1 to i32
    %c0_i32_0 = arith.constant 0 : i32
    %2 = arith.cmpi ne, %1, %c0_i32_0 : i32
    scf.if %2 {
      %cst_9 = arith.constant 0.000000e+00 : f32
      %12 = vector.broadcast %cst_9 : f32 to vector<8x32xf32>
      %c0_10 = arith.constant 0 : index
      %c0_11 = arith.constant 0 : index
      %13 = vector.load %arg6[%c0_10, %c0_11] : memref<8x32xf32, #tpu.memory_space<vmem>>, vector<8x32xf32>
      tpu.vector_store %arg6[%c0_10, %c0_11], %12 {strides = array<i32>} : memref<8x32xf32, #tpu.memory_space<vmem>>, vector<8x32xf32>,
    } else {
    }
    %c0 = arith.constant 0 : index
    %c0_1 = arith.constant 0 : index
    %3 = vector.load %arg6[%c0, %c0_1] : memref<8x32xf32, #tpu.memory_space<vmem>>, vector<8x32xf32>
    %c0_2 = arith.constant 0 : index
    %c0_3 = arith.constant 0 : index
    %4 = vector.load %arg3[%c0_2, %c0_3] : memref<8x384xbf16, #tpu.memory_space<vmem>>, vector<8x384xbf16>
    %c0_4 = arith.constant 0 : index
    %c0_5 = arith.constant 0 : index
    %5 = vector.load %arg4[%c0_4, %c0_5] : memref<384x32xbf16, #tpu.memory_space<vmem>>, vector<384x32xbf16>
    %cst = arith.constant dense<0.000000e+00> : vector<8x32xf32>
    %6 = tpu.matmul %4, %5, %cst {dimension_numbers = #tpu.dot_dimension_numbers<[1], [0], [0], [1], [0, 0, 1, 1], [], []>} : vector<8x384xbf16>, vector<384x32xbf16>, vector<8x32xf32> -> vector<8x32xf32>
    %7 = arith.addf %3, %6 : vector<8x32xf32>
    %c0_6 = arith.constant 0 : index
    %c0_7 = arith.constant 0 : index
    %8 = vector.load %arg6[%c0_6, %c0_7] : memref<8x32xf32, #tpu.memory_space<vmem>>, vector<8x32xf32>
    tpu.vector_store %arg6[%c0_6, %c0_7], %7 {strides = array<i32>} : memref<8x32xf32, #tpu.memory_space<vmem>>, vector<8x32xf32>,
    %c1_i32 = arith.constant 1 : i32
    %9 = arith.cmpi eq, %arg2, %c1_i32 : i32
    %10 = arith.extui %9 : i1 to i32
    %c0_i32_8 = arith.constant 0 : i32
    %11 = arith.cmpi ne, %10, %c0_i32_8 : i32
    scf.if %11 {
      %c0_9 = arith.constant 0 : index
      %c0_10 = arith.constant 0 : index
      %12 = vector.load %arg6[%c0_9, %c0_10] : memref<8x32xf32, #tpu.memory_space<vmem>>, vector<8x32xf32>
      %13 = arith.truncf %12 : vector<8x32xf32> to vector<8x32xbf16>
      %c0_11 = arith.constant 0 : index
      %c0_12 = arith.constant 0 : index
      %14 = vector.load %arg5[%c0_11, %c0_12] : memref<8x32xbf16, #tpu.memory_space<vmem>>, vector<8x32xbf16>
      tpu.vector_store %arg5[%c0_11, %c0_12], %13 {strides = array<i32>} : memref<8x32xbf16, #tpu.memory_space<vmem>>, vector<8x32xbf16>,
    } else {
    }
    return
  }
  func.func @transform_0(%arg0: i32, %arg1: i32, %arg2: i32) -> (i32, i32) {
    %c0_i32 = arith.constant 0 : i32
    return %arg0, %arg2 : i32, i32
  }
  func.func @transform_1(%arg0: i32, %arg1: i32, %arg2: i32) -> (i32, i32) {
    %c0_i32 = arith.constant 0 : i32
    return %arg2, %arg1 : i32, i32
  }
  func.func @transform_2(%arg0: i32, %arg1: i32, %arg2: i32) -> (i32, i32) {
    %c0_i32 = arith.constant 0 : i32
    return %arg0, %arg1 : i32, i32
  }
}

</mosaic_0001>

<bundles_post_ra>
// kernel: tpu_custom_call.1
= control target key start
LH: loop header
LB: loop body
LE: loop exit
PB: predicated region body
PF: predicated region fallthrough
CT: control target
= control target key end

     0   :  { %7 = vsyncpa [#allocation4], 0  ;;  %s818_s9 = smov 0   ;;  %s820_s10 = smov 0   ;;  %s916_s0 = inlined_call_operand.vmem [shape: bf16[8,768], index: 0, kind: input, shape index: {}]   ;;  %s917_s1 = inlined_call_operand.vmem [shape: bf16[768,32], index: 1, kind: input, shape index: {}]   ;;  %s918_s2 = inlined_call_operand.hbm [shape: bf16[8,32], index: 2, kind: output, shape index: {}]  }
   0x1   :  { %s822_s11 = smov 0  }
   0x2 LB: > { %s594_s12 = sadd.s32 4294967295, %s797_s11   ;;  %s25_s13 = sadd.s32 1, %s793_s10  ;;  %s797_s11 = sphi %s822_s11, %s13_s11   ;;  %s793_s10 = sphi %s820_s10, %s921_s10   ;;  %s789_s9 = sphi %s818_s9, %s920_s9  }
   0x3   : > { %p26_p0 = scmp.ge.s32.totalorder %s25_s13, 2  ;;  %p597_p1 = scmp.ge.s32.totalorder %s797_s11, 1 }
   0x4   : > { %p157_p2 = scmp.lt.s32.totalorder %s797_s11, 3 }
   0x5   : > { %s923_s13 = smov (%p26_p0, %s25_s13), 0 }
   0x6   : > { %p158_p3 = pnand %p597_p1, %p157_p2 }
   0x7   : > { %s186_s14 = smul.u32 (!%p158_p3), 3, %s789_s9  ;;  %p600_p6 = scmp.ne.s32.totalorder (!%p158_p3), %s789_s9, 0 }
   0x8   : > { %161 = sbr.rel (%p158_p3) target bundleno = 313 (0x139), region = 28 }
   0x9   : > { %s196_s15 = smul.u32 (!%p158_p3), 48, %s789_s9  ;;  %p189_p4 = scmp.lt.s32.totalorder (!%p158_p3), %s186_s14, 5 }
   0xb   : > { %p197_p5 = scmp.lt.s32.totalorder (!%p158_p3), %s196_s15, 95 }
   0xf   : > { %s925_s14 = smov (!%p189_p4, %s186_s14), 5  ;;  %s927_s15 = smov (!%p197_p5, %s196_s15), 95 }
  0x10   : > { %s598_s16 = sshll.u32 %s925_s14, 2  ;;  %s599_s20 = sshll.u32 %s927_s15, 2  ;;  %vm210_vm0 = vcmask (!%p600_p6), 261120   ;;  %v799_v0 = vmov (!%p600_p6), 0.0  }
  0x11   : > { %s844_s19 = scalar_lea.vmem %s916_s0, %s598_s16  ;;  %s849_s23 = scalar_lea.vmem %s917_s1, %s599_s20  ;;  %211 = vst.msk [vmem:[#allocation2] sm:$0xff] (!%p600_p6), %vm210_vm0, %v799_v0 }
  0x12   : > { %209 = sbr.rel (%p600_p6) target bundleno = 25 (0x19), region = 32 }
  0x19 PF: > { %v718_v1 = vld [vmem:[%s849_s23 + $0x40] sm:$0xff]   ;;  %v800_v2 = vmov 0.0   ;;  %vm801_vm1 = vmmov 0   ;;  %v721_v5 = vld [vmem:[%s849_s23 + $0x48] sm:$0xff]   ;;  %v724_v8 = vld [vmem:[%s849_s23 + $0x50] sm:$0xff]   ;;  %vm499_vm2 = vcmask 261120  }
  0x1a   : > { %664 = vmatprep.subr.bf16.mxu1 %v800_v2  ;;  %v719_v3 = vld [vmem:[%s849_s23] sm:$0xff]   ;;  %633 = vmatprep.subr.bf16.mxu0 %v718_v1  ;;  %v722_v6 = vld [vmem:[%s849_s23 + $0x8] sm:$0xff]   ;;  %v725_v9 = vld [vmem:[%s849_s23 + $0x10] sm:$0xff]   ;;  %p628_p7 = scmp.ne.s32.totalorder %s789_s9, 1 }
  0x1b   : > { %v720_v4 = vld [vmem:[%s849_s23 + $0x80] sm:$0xff]   ;;  %680 = vmatprep.mubr.msk.bf16.mxu1 %vm801_vm1, %v800_v2  ;;  %634 = vmatpush3.bf16.msra.mxu0 %v719_v3  ;;  %v723_v7 = vld [vmem:[%s849_s23 + $0x88] sm:$0xff]   ;;  %v726_v10 = vld [vmem:[%s849_s23 + $0x90] sm:$0xff]   ;;  %vm507_vm3 = vcmask (!%p628_p7), 257024  }
  0x1c   : > { %665 = vmatpush3.bf16.msra.mxu1 %v720_v4  ;;  %635 = vmatprep.subr.bf16.mxu0 %v721_v5  ;;  %v727_v11 = vld [vmem:[%s849_s23 + $0x58] sm:$0xff]   ;;  %v730_v14 = vld [vmem:[%s849_s23 + $0x60] sm:$0xff]   ;;  %v733_v17 = vld [vmem:[%s849_s23 + $0x68] sm:$0xff]  }
  0x1d   : > { %666 = vmatprep.subr.bf16.mxu1 %v800_v2  ;;  %v728_v12 = vld [vmem:[%s849_s23 + $0x18] sm:$0xff]   ;;  %v731_v15 = vld [vmem:[%s849_s23 + $0x20] sm:$0xff]   ;;  %v734_v18 = vld [vmem:[%s849_s23 + $0x28] sm:$0xff]  }
  0x1e   : > { %v729_v13 = vld [vmem:[%s849_s23 + $0x98] sm:$0xff]   ;;  %v732_v16 = vld [vmem:[%s849_s23 + $0xa0] sm:$0xff]   ;;  %v735_v19 = vld [vmem:[%s849_s23 + $0xa8] sm:$0xff]  }
  0x1f   : > { %636 = vmatpush3.bf16.msra.mxu0 %v722_v6  ;;  %v736_v20 = vld [vmem:[%s849_s23 + $0x70] sm:$0xff]   ;;  %v739_v23 = vld [vmem:[%s849_s23 + $0x78] sm:$0xff]   ;;  %v213_v24 = vld [vmem:[%s844_s19] sm:$0xff] }
  0x20   : > { %667 = vmatpush3.bf16.msra.mxu1 %v723_v7  ;;  %637 = vmatprep.subr.bf16.mxu0 %v724_v8  ;;  %v737_v21 = vld [vmem:[%s849_s23 + $0x30] sm:$0xff]   ;;  %v602_v25 = vcombine.high %v213_v24, %v213_v24  ;;  %v740_v26 = vld [vmem:[%s849_s23 + $0x38] sm:$0xff]   ;;  %v601_v28 = vcombine.low %v213_v24, %v213_v24  ;;  %v744_v29 = vld [vmem:[%s844_s19 + $0x8] ss:$0 sps:$4 sm:$0xff]  }
  0x21   : > { %668 = vmatprep.subr.bf16.mxu1 %v800_v2  ;;  %v738_v22 = vld [vmem:[%s849_s23 + $0xb0] sm:$0xff]   ;;  %v741_v27 = vld [vmem:[%s849_s23 + $0xb8] sm:$0xff]   ;;  %v212_v36 = vld [vmem:[#allocation2] sm:$0xff] }
  0x22   : > { %450 = vmatprep.mubr.bf16.mxu0 %v602_v25 }
  0x23   : > { %638 = vmatpush3.bf16.msra.mxu0 %v725_v9 }
  0x24   : > { %669 = vmatpush3.bf16.msra.mxu1 %v726_v10  ;;  %639 = vmatprep.subr.bf16.mxu0 %v727_v11 }
  0x25   : > { %670 = vmatprep.subr.bf16.mxu1 %v800_v2 }
  0x27   : > { %640 = vmatpush3.bf16.msra.mxu0 %v728_v12 }
  0x28   : > { %671 = vmatpush3.bf16.msra.mxu1 %v729_v13  ;;  %641 = vmatprep.subr.bf16.mxu0 %v730_v14 }
  0x29   : > { %672 = vmatprep.subr.bf16.mxu1 %v800_v2 }
  0x2b   : > { %642 = vmatpush3.bf16.msra.mxu0 %v731_v15 }
  0x2c   : > { %673 = vmatpush3.bf16.msra.mxu1 %v732_v16  ;;  %643 = vmatprep.subr.bf16.mxu0 %v733_v17 }
  0x2d   : > { %674 = vmatprep.subr.bf16.mxu1 %v800_v2 }
  0x2f   : > { %644 = vmatpush3.bf16.msra.mxu0 %v734_v18 }
  0x30   : > { %675 = vmatpush3.bf16.msra.mxu1 %v735_v19  ;;  %645 = vmatprep.subr.bf16.mxu0 %v736_v20 }
  0x31   : > { %676 = vmatprep.subr.bf16.mxu1 %v800_v2 }
  0x33   : > { %646 = vmatpush3.bf16.msra.mxu0 %v737_v21 }
  0x34   : > { %677 = vmatpush3.bf16.msra.mxu1 %v738_v22  ;;  %647 = vmatprep.subr.bf16.mxu0 %v739_v23 }
  0x35   : > { %678 = vmatprep.subr.bf16.mxu1 %v800_v2 }
  0x37   : > { %648 = vmatpush3.bf16.msra.mxu0 %v740_v26 }
  0x38   : > { %679 = vmatpush3.bf16.msra.mxu1 %v741_v27 }
  0x3a   : > { %451 = vmatmul.mubr.bf16.vlgmr.msra.gmra.mrb[0].mxu0 %v601_v28 }
  0x3b   : > { %681 = vmatmul.mubr.bf16.vlgmr.msra.gmra.mrb[0].mxu1 %v744_v29 }
 0x10d   : > { %v649_v30 = vpop.f32.mrb[0].mxu0 }
 0x10e   : > { %v492_v31 = vpop.f32.mrb[0].mxu1  ;;  %v650_v32 = vpop.f32.mrb[1].mxu0 }
 0x10f   : > { %v651_v33 = vadd.f32 %v650_v32, %v649_v30  ;;  %v682_v34 = vpop.f32.mrb[1].mxu1  ;;  %v652_v35 = vpop.f32.mrb[2].mxu0  ;;  %504 = sbr.rel (%p628_p7) target bundleno = 288 (0x120), region = 36 }
 0x110   : > { %v495_v37 = vpop.f32.mrb[2].mxu1  ;;  %v653_v38 = vpop.f32.mrb[3].mxu0 }
 0x111   : > { %v493_v39 = vadd.f32 %v651_v33, %v492_v31  ;;  %v683_v40 = vpop.f32.mrb[3].mxu1 }
 0x113   : > { %v498_v41 = vadd.f32 %v493_v39, %v212_v36 }
 0x115   : > { %500 = vst.msk [vmem:[#allocation2] sm:$0xff] %vm499_vm2, %v498_v41 }
 0x11c   : > { %v505_v42 = vld [vmem:[#allocation2] sm:$0xff] }
 0x11d   : > { %v506_v43 = vpack.c.bf16 %v505_v42, %v505_v42 }
 0x11f   : > { %508 = vst.msk [vmem:[#allocation3] sm:$0xf] %vm507_vm3, %v506_v43 }
 0x120 PF: > { %p881_p8 = scmp.eq.s32.totalorder %s594_s12, 1  ;;  %s802_s25 = smov [#allocation3]  }
 0x121   : > { %s519_s26 = sshll.u32 %s802_s25, 4  ;;  %s520_s26 = int_to_ptr.vmem [resolvable:$true] %s519_s26 }
 0x122   : > { %s745_s27 = scalar_lea.vmem %s520_s26, 64  ;;  %p752_p12 = scmp.lt.s32.totalorder %s520_s26, %s520_s26 }
 0x123   : > { %p746_p9 = scmp.ne.s32.totalorder %s520_s26, %s745_s27  ;;  %p753_p13 = scmp.lt.s32.totalorder %s745_s27, %s745_s27 }
 0x125   : > { %p747_p10 = pnand %p746_p9, %p881_p8  ;;  %p754_p0 = por %p753_p13, %p752_p12 }
 0x127   : > { %p748_p11 = pneg %p747_p10 }
 0x129   : > { %p755_p1 = pnand %p754_p0, %p748_p11 }
 0x12b   : > { %758 = shalt.err (!%p755_p1)
}
 0x12c   : > { %s759_s30 = scalar_lea.hbm %s918_s2, 64 }
 0x12d   : > { %p760_p2 = scmp.ne.s32.totalorder %s918_s2, %s759_s30  ;;  %p765_p5 = scmp.lt.u32.totalorder %s759_s30, %s918_s2 }
 0x12f   : > { %p761_p3 = pnand %p760_p2, %p881_p8 }
 0x131   : > { %p762_p4 = pneg %p761_p3 }
 0x133   : > { %p767_p6 = pnand %p765_p5, %p762_p4 }
 0x135   : > { %770 = shalt.err (!%p767_p6)
}
 0x136   : > { %685 = dma.vmem_to_hbm [thread:$0]  (%p881_p8), %s520_s26, 64, %s918_s2, [#allocation4]  }
 0x137   : > { %784 = dma.done.wait (%p881_p8), [#allocation4], 64  }
 0x138   : > { %786 = vsyncadd (%p881_p8), [#allocation4], 4294967232 }
 0x139 PF: > { %s13_s11 = sadd.s32 1, %s797_s11   ;;  %s920_s9 = smov %s793_s10 }
 0x13a   : > { %p10_p7 = scmp.ge.s32.totalorder %s13_s11, 4   ;;  %s921_s10 = smov %s923_s13 }
 0x13c   :  { %12 = sbr.rel (!%p10_p7) target bundleno = 2 (0x2), region = 67 }
 0x143   :  { %532 = vsyncpa [#allocation4], 1 }
 0x144   :  { %534 = vsyncpa [#allocation4 + $0x1], 1 }

</bundles_post_ra>
